<compile_context>
chip_gen: v7x
topology: tpu7x:2x2x1
jax: 0.10.0
libtpu: 0.0.40
codegen_flags: <defaults>
</compile_context>

<pallas_src>
from functools import partial

import jax
import jax.numpy as jnp
from jax.experimental import pallas as pl
from jax.experimental.pallas import tpu as pltpu


def channel_kernel(x_ref, we_ref, be_ref, noise_ref, wd_ref, bd_ref, out_ref):
    # ---- encoder: codeword = x @ We + be   (bf16 MXU, f32 accumulate) ----
    code = jnp.dot(x_ref[...], we_ref[...], preferred_element_type=jnp.float32)
    # ---- channel: add pre-scaled Gaussian noise (f32) ----
    rec = code + be_ref[...] + noise_ref[...]
    # ---- decoder: out = rec @ Wd + bd      (bf16 MXU, f32 accumulate) ----
    out = jnp.dot(rec.astype(jnp.bfloat16), wd_ref[...],
                  preferred_element_type=jnp.float32)
    out_ref[...] = (out + bd_ref[...]).astype(out_ref.dtype)


@partial(jax.jit, static_argnames=("tb",))
def channel_forward(x, we, be, wd, bd, noise_std, key, *, tb=512):
    """Fused enc -> +noise -> dec.

    x: (B, Din) f32, we: (Din, CODE), be: (1, CODE), wd: (CODE, Dout),
    bd: (1, Dout).  Returns (B, Dout) f32.
    """
    B, din = x.shape
    din_w, code = we.shape
    assert din == din_w
    dout = wd.shape[1]

    # Channel noise, same distribution as torch.randn((i, j)) on the codeword.
    noise = noise_std * jax.random.normal(key, (B, code), dtype=jnp.float32)

    # Lane-dense output: pad Dout up to a multiple of 128 (sliced away below).
    dout_p = ((dout + 127) // 128) * 128
    wd_p = jnp.zeros((code, dout_p), wd.dtype).at[:, :dout].set(wd)
    bd_p = jnp.zeros((1, dout_p), bd.dtype).at[:, :dout].set(bd)

    # Batch tiling (pad B up to a tile multiple; padded rows sliced away).
    tb = min(tb, B)
    bp = pl.cdiv(B, tb) * tb
    if bp != B:
        x = jnp.zeros((bp, din), x.dtype).at[:B].set(x)
        noise = jnp.zeros((bp, code), noise.dtype).at[:B].set(noise)

    # bf16 MXU operands; biases / noise / accumulation stay f32.
    x_bf = x.astype(jnp.bfloat16)
    we_bf = we.astype(jnp.bfloat16)
    wd_bf = wd_p.astype(jnp.bfloat16)
    be_f = be.astype(jnp.float32)
    bd_f = bd_p.astype(jnp.float32)

    grid = (bp // tb,)
    flops = 2 * bp * code * (din + dout_p)
    bytes_accessed = (x_bf.size * 2 + we_bf.size * 2 + wd_bf.size * 2
                      + noise.size * 4 + be_f.size * 4 + bd_f.size * 4
                      + bp * dout_p * 4)

    out_p = pl.pallas_call(
        channel_kernel,
        out_shape=jax.ShapeDtypeStruct((bp, dout_p), jnp.float32),
        grid=grid,
        in_specs=[
            pl.BlockSpec((tb, din), lambda i: (i, 0)),       # x tile
            pl.BlockSpec((din, code), lambda i: (0, 0)),     # We (resident)
            pl.BlockSpec((1, code), lambda i: (0, 0)),       # be (resident)
            pl.BlockSpec((tb, code), lambda i: (i, 0)),      # noise tile
            pl.BlockSpec((code, dout_p), lambda i: (0, 0)),  # Wd (resident)
            pl.BlockSpec((1, dout_p), lambda i: (0, 0)),     # bd (resident)
        ],
        out_specs=pl.BlockSpec((tb, dout_p), lambda i: (i, 0)),
        compiler_params=pltpu.CompilerParams(
            dimension_semantics=("parallel",),
            vmem_limit_bytes=32 * 1024 * 1024,
        ),
        cost_estimate=pl.CostEstimate(flops=flops, transcendentals=0,
                                      bytes_accessed=bytes_accessed),
    )(x_bf, we_bf, be_f, noise, wd_bf, bd_f)

    return out_p[:B, :dout]


if __name__ == "__main__":
    # Small shapes consistent with the module's 2-D codeword (B, feature).
    B, DIN, CODE, DOUT = 8, 32, 128, 32

    key = jax.random.PRNGKey(0)
    k_x, k_we, k_be, k_wd, k_bd, k_noise = jax.random.split(key, 6)

    x = jax.random.normal(k_x, (B, DIN), dtype=jnp.float32)
    we = jax.random.normal(k_we, (DIN, CODE), dtype=jnp.float32) * 0.05
    be = jax.random.normal(k_be, (1, CODE), dtype=jnp.float32) * 0.05
    wd = jax.random.normal(k_wd, (CODE, DOUT), dtype=jnp.float32) * 0.05
    bd = jax.random.normal(k_bd, (1, DOUT), dtype=jnp.float32) * 0.05

    noise_std = 0.1

    out = channel_forward(x, we, be, wd, bd, noise_std, k_noise)
    out = jax.block_until_ready(out)

    # Pure-JAX reference using the identical noise draw / bf16 matmul path.
    noise = noise_std * jax.random.normal(k_noise, (B, CODE), dtype=jnp.float32)
    code = jnp.dot(x.astype(jnp.bfloat16), we.astype(jnp.bfloat16),
                   preferred_element_type=jnp.float32) + be + noise
    ref = jnp.dot(code.astype(jnp.bfloat16), wd.astype(jnp.bfloat16),
                  preferred_element_type=jnp.float32) + bd

    assert out.shape == (B, DOUT) and out.dtype == jnp.float32
    assert bool(jnp.all(jnp.isfinite(out)))
    assert bool(jnp.allclose(out, ref, atol=5e-2, rtol=5e-2))
    print("KERNEL_OK")
</pallas_src>

<mosaic_0001>
module attributes {stable_mosaic.version = 11 : i64} {
  func.func @channel_kernel(%arg0: i32, %arg1: memref<8x32xbf16, #tpu.memory_space<vmem>>, %arg2: memref<32x128xbf16, #tpu.memory_space<vmem>>, %arg3: memref<1x128xf32, #tpu.memory_space<vmem>>, %arg4: memref<8x128xf32, #tpu.memory_space<vmem>>, %arg5: memref<128x128xbf16, #tpu.memory_space<vmem>>, %arg6: memref<1x128xf32, #tpu.memory_space<vmem>>, %arg7: memref<8x128xf32, #tpu.memory_space<vmem>>) attributes {dimension_semantics = [#tpu.dimension_semantics<parallel>], iteration_bounds = array<i64: 1>, scalar_prefetch = 0 : i64, scratch_operands = 0 : i64, tpu.core_type = #tpu.core_type<tc>, window_params = [{transform_indices = @transform_0, window_bounds = array<i64: 8, 32>}, {pipeline_mode = #tpu.pipeline_mode<synchronous>, transform_indices = @transform_1, window_bounds = array<i64: 32, 128>}, {pipeline_mode = #tpu.pipeline_mode<synchronous>, transform_indices = @transform_2, window_bounds = array<i64: 1, 128>}, {transform_indices = @transform_3, window_bounds = array<i64: 8, 128>}, {pipeline_mode = #tpu.pipeline_mode<synchronous>, transform_indices = @transform_4, window_bounds = array<i64: 128, 128>}, {pipeline_mode = #tpu.pipeline_mode<synchronous>, transform_indices = @transform_5, window_bounds = array<i64: 1, 128>}, {transform_indices = @transform_6, window_bounds = array<i64: 8, 128>}]} {
    %c0 = arith.constant 0 : index
    %c0_0 = arith.constant 0 : index
    %0 = vector.load %arg1[%c0, %c0_0] : memref<8x32xbf16, #tpu.memory_space<vmem>>, vector<8x32xbf16>
    %c0_1 = arith.constant 0 : index
    %c0_2 = arith.constant 0 : index
    %1 = vector.load %arg2[%c0_1, %c0_2] : memref<32x128xbf16, #tpu.memory_space<vmem>>, vector<32x128xbf16>
    %cst = arith.constant dense<0.000000e+00> : vector<8x128xf32>
    %2 = tpu.matmul %0, %1, %cst {dimension_numbers = #tpu.dot_dimension_numbers<[1], [0], [0], [1], [0, 0, 1, 1], [], []>} : vector<8x32xbf16>, vector<32x128xbf16>, vector<8x128xf32> -> vector<8x128xf32>
    %c0_3 = arith.constant 0 : index
    %c0_4 = arith.constant 0 : index
    %3 = vector.load %arg3[%c0_3, %c0_4] : memref<1x128xf32, #tpu.memory_space<vmem>>, vector<1x128xf32>
    %4 = vector.broadcast %3 : vector<1x128xf32> to vector<8x128xf32>
    %5 = arith.addf %2, %4 : vector<8x128xf32>
    %c0_5 = arith.constant 0 : index
    %c0_6 = arith.constant 0 : index
    %6 = vector.load %arg4[%c0_5, %c0_6] : memref<8x128xf32, #tpu.memory_space<vmem>>, vector<8x128xf32>
    %7 = arith.addf %5, %6 : vector<8x128xf32>
    %8 = arith.truncf %7 : vector<8x128xf32> to vector<8x128xbf16>
    %c0_7 = arith.constant 0 : index
    %c0_8 = arith.constant 0 : index
    %9 = vector.load %arg5[%c0_7, %c0_8] : memref<128x128xbf16, #tpu.memory_space<vmem>>, vector<128x128xbf16>
    %cst_9 = arith.constant dense<0.000000e+00> : vector<8x128xf32>
    %10 = tpu.matmul %8, %9, %cst_9 {dimension_numbers = #tpu.dot_dimension_numbers<[1], [0], [0], [1], [0, 0, 1, 1], [], []>} : vector<8x128xbf16>, vector<128x128xbf16>, vector<8x128xf32> -> vector<8x128xf32>
    %c0_10 = arith.constant 0 : index
    %c0_11 = arith.constant 0 : index
    %11 = vector.load %arg6[%c0_10, %c0_11] : memref<1x128xf32, #tpu.memory_space<vmem>>, vector<1x128xf32>
    %12 = vector.broadcast %11 : vector<1x128xf32> to vector<8x128xf32>
    %13 = arith.addf %10, %12 : vector<8x128xf32>
    %c0_12 = arith.constant 0 : index
    %c0_13 = arith.constant 0 : index
    %14 = vector.load %arg7[%c0_12, %c0_13] : memref<8x128xf32, #tpu.memory_space<vmem>>, vector<8x128xf32>
    tpu.vector_store %arg7[%c0_12, %c0_13], %13 {strides = array<i32>} : memref<8x128xf32, #tpu.memory_space<vmem>>, vector<8x128xf32>,
    return
  }
  func.func @transform_0(%arg0: i32) -> (i32, i32) {
    %c0_i32 = arith.constant 0 : i32
    %c0_i32_0 = arith.constant 0 : i32
    return %arg0, %c0_i32 : i32, i32
  }
  func.func @transform_1(%arg0: i32) -> (i32, i32) {
    %c0_i32 = arith.constant 0 : i32
    %c0_i32_0 = arith.constant 0 : i32
    %c0_i32_1 = arith.constant 0 : i32
    return %c0_i32, %c0_i32_0 : i32, i32
  }
  func.func @transform_2(%arg0: i32) -> (i32, i32) {
    %c0_i32 = arith.constant 0 : i32
    %c0_i32_0 = arith.constant 0 : i32
    %c0_i32_1 = arith.constant 0 : i32
    return %c0_i32, %c0_i32_0 : i32, i32
  }
  func.func @transform_3(%arg0: i32) -> (i32, i32) {
    %c0_i32 = arith.constant 0 : i32
    %c0_i32_0 = arith.constant 0 : i32
    return %arg0, %c0_i32 : i32, i32
  }
  func.func @transform_4(%arg0: i32) -> (i32, i32) {
    %c0_i32 = arith.constant 0 : i32
    %c0_i32_0 = arith.constant 0 : i32
    %c0_i32_1 = arith.constant 0 : i32
    return %c0_i32, %c0_i32_0 : i32, i32
  }
  func.func @transform_5(%arg0: i32) -> (i32, i32) {
    %c0_i32 = arith.constant 0 : i32
    %c0_i32_0 = arith.constant 0 : i32
    %c0_i32_1 = arith.constant 0 : i32
    return %c0_i32, %c0_i32_0 : i32, i32
  }
  func.func @transform_6(%arg0: i32) -> (i32, i32) {
    %c0_i32 = arith.constant 0 : i32
    %c0_i32_0 = arith.constant 0 : i32
    return %arg0, %c0_i32 : i32, i32
  }
}

</mosaic_0001>

<bundles_post_ra>
// kernel: channel_forward.1
= control target key start
LH: loop header
LB: loop body
LE: loop exit
PB: predicated region body
PF: predicated region fallthrough
CT: control target
= control target key end

     0   :  { %v312_v1 = vmov 0.0   ;;  %vm313_vm0 = vmmov 0   ;;  %vm49_vm1 = vcmask 261120   ;;  %s404_s0 = inlined_call_operand.vmem [shape: bf16[8,32], index: 0, kind: input, shape index: {}]   ;;  %s405_s1 = inlined_call_operand.vmem [shape: bf16[32,128], index: 1, kind: input, shape index: {}]   ;;  %s406_s2 = inlined_call_operand.vmem [shape: f32[1,128], index: 2, kind: input, shape index: {}]   ;;  %s407_s3 = inlined_call_operand.vmem [shape: f32[8,128], index: 3, kind: input, shape index: {}]   ;;  %s408_s4 = inlined_call_operand.vmem [shape: bf16[128,128], index: 4, kind: input, shape index: {}]   ;;  %s409_s5 = inlined_call_operand.vmem [shape: f32[1,128], index: 5, kind: input, shape index: {}]   ;;  %s410_s6 = inlined_call_operand.hbm [shape: f32[8,128], index: 6, kind: output, shape index: {}]  }
   0x1   :  { %v278_v0 = vld [vmem:[%s405_s1] sm:$0xff]   ;;  %247 = vmatprep.subr.bf16.mxu0 %v312_v1  ;;  %255 = vmatprep.subr.bf16.mxu1 %v312_v1  ;;  %v279_v2 = vld [vmem:[%s405_s1 + $0x8] sm:$0xff]   ;;  %v282_v6 = vld [vmem:[%s408_s4 + $0x10] sm:$0xff]  }
   0x2   :  { %248 = vmatpush3.bf16.msra.mxu0 %v278_v0  ;;  %251 = vmatprep.mubr.msk.bf16.mxu0 %vm313_vm0, %v312_v1  ;;  %v280_v3 = vld [vmem:[%s408_s4] sm:$0xff]   ;;  %v281_v4 = vld [vmem:[%s408_s4 + $0x8] sm:$0xff]  }
   0x3   :  { %249 = vmatprep.subr.bf16.mxu0 %v312_v1  ;;  %271 = vmatprep.mubr.msk.bf16.mxu1 %vm313_vm0, %v312_v1  ;;  %v25_v5 = vld [vmem:[%s404_s0] sm:$0xf] }
   0x4   :  { %256 = vmatpush3.bf16.msra.mxu1 %v280_v3 }
   0x5   :  { %257 = vmatprep.subr.bf16.mxu1 %v312_v1 }
   0x6   :  { %250 = vmatpush3.bf16.msra.mxu0 %v279_v2 }
   0x8   :  { %258 = vmatpush3.bf16.msra.mxu1 %v281_v4 }
   0x9   :  { %252 = vmatmul.mubr.msk.bf16.vlgmr.msra.gmra.mrb[0].mxu0 %vm49_vm1, %v25_v5  ;;  %259 = vmatprep.subr.bf16.mxu1 %v312_v1 }
   0xa   :  { %11 = vsyncpa [#allocation3], 0  ;;  %v283_v7 = vld [vmem:[%s408_s4 + $0x18] sm:$0xff]   ;;  %v284_v8 = vld [vmem:[%s408_s4 + $0x20] sm:$0xff]  }
   0xb   :  { %v285_v9 = vld [vmem:[%s408_s4 + $0x28] sm:$0xff]   ;;  %v286_v10 = vld [vmem:[%s408_s4 + $0x30] sm:$0xff]   ;;  %v287_v11 = vld [vmem:[%s408_s4 + $0x38] sm:$0xff]   ;;  %s314_s4 = smov [#allocation2]  }
   0xc   :  { %260 = vmatpush3.bf16.msra.mxu1 %v282_v6  ;;  %v222_v12 = vld [vmem:[%s406_s2] ss:$0 sm:$0xff]  ;;  %s214_s23 = sshll.u32 %s314_s4, 4  ;;  %s215_s23 = int_to_ptr.vmem [resolvable:$true] %s214_s23 }
   0xd   :  { %261 = vmatprep.subr.bf16.mxu1 %v312_v1  ;;  %v93_v14 = vld [vmem:[%s407_s3] sm:$0xff]  ;;  %s288_s2 = scalar_lea.vmem %s215_s23, 128  ;;  %p293_p1 = scmp.lt.s32.totalorder %s215_s23, %s215_s23 }
   0xe   :  { %v226_v21 = vld [vmem:[%s409_s5] ss:$0 sm:$0xff]  ;;  %p289_p0 = scmp.ne.s32.totalorder %s215_s23, %s288_s2  ;;  %p294_p2 = scmp.lt.s32.totalorder %s288_s2, %s288_s2 }
  0x10   :  { %262 = vmatpush3.bf16.msra.mxu1 %v283_v7  ;;  %p295_p3 = por %p294_p2, %p293_p1 }
  0x11   :  { %263 = vmatprep.subr.bf16.mxu1 %v312_v1 }
  0x12   :  { %p296_p4 = pnand %p295_p3, %p289_p0 }
  0x14   :  { %264 = vmatpush3.bf16.msra.mxu1 %v284_v8 }
  0x15   :  { %265 = vmatprep.subr.bf16.mxu1 %v312_v1 }
  0x18   :  { %266 = vmatpush3.bf16.msra.mxu1 %v285_v9 }
  0x19   :  { %267 = vmatprep.subr.bf16.mxu1 %v312_v1 }
  0x1c   :  { %268 = vmatpush3.bf16.msra.mxu1 %v286_v10 }
  0x1d   :  { %269 = vmatprep.subr.bf16.mxu1 %v312_v1 }
  0x20   :  { %270 = vmatpush3.bf16.msra.mxu1 %v287_v11 }
  0xdc   :  { %v87_v13 = vpop.f32.mrb[0].mxu0 }
  0xdd   :  { %v88_v15 = vadd.f32 %v222_v12, %v87_v13  ;;  %v253_v16 = vpop.f32.mrb[1].mxu0 }
  0xde   :  { %v90_v17 = vpop.f32.mrb[2].mxu0 }
  0xdf   :  { %v94_v18 = vadd.f32 %v93_v14, %v88_v15  ;;  %v254_v19 = vpop.f32.mrb[3].mxu0 }
  0xe1   :  { %v95_v20 = vpack.c.bf16 %v94_v18, %v94_v18 }
  0xe3   :  { %272 = vmatmul.mubr.bf16.vlgmr.msra.gmra.mrb[0].mxu1 %v95_v20 }
 0x1b6   :  { %v201_v22 = vpop.f32.mrb[0].mxu1 }
 0x1b7   :  { %v202_v23 = vadd.f32 %v226_v21, %v201_v22  ;;  %v273_v24 = vpop.f32.mrb[1].mxu1 }
 0x1b8   :  { %v204_v25 = vpop.f32.mrb[2].mxu1 }
 0x1b9   :  { %207 = vst [vmem:[#allocation2] sm:$0xff] %v202_v23  ;;  %v274_v26 = vpop.f32.mrb[3].mxu1 }
 0x1ba   :  { %299 = shalt.err (!%p296_p4)
}
 0x1bb   :  { %s300_s5 = scalar_lea.hbm %s410_s6, 128 }
 0x1bc   :  { %p301_p5 = scmp.ne.s32.totalorder %s410_s6, %s300_s5  ;;  %p304_p6 = scmp.lt.u32.totalorder %s300_s5, %s410_s6 }
 0x1be   :  { %p306_p7 = pnand %p304_p6, %p301_p5 }
 0x1c0   :  { %309 = shalt.err (!%p306_p7)
}
 0x1c1   :  { %217 = dma.vmem_to_hbm [thread:$0]  %s215_s23, 128, %s410_s6, [#allocation3]  }
 0x1c2   :  { %310 = dma.done.wait [#allocation3], 128  }
 0x1c3   :  { %311 = vsyncadd [#allocation3], 4294967168 }
 0x1c4   :  { %221 = vsyncpa [#allocation3], 1 }

</bundles_post_ra>
